<compile_context>
chip_gen: v5e
topology: v5e:2x2
jax: 0.10.0
libtpu: 0.0.40
codegen_flags: <defaults>
</compile_context>

<pallas_src>
import jax
import jax.numpy as jnp
from jax.experimental import pallas as pl
from jax.experimental.pallas import tpu as pltpu

_IN = 784
_H = 30
_OUT = 10
_OUT_PAD = 128  # lane-dense output slab; real classes are columns [:10]


def _round_up(n, m):
    return ((n + m - 1) // m) * m


def _mlp_kernel(x_ref, w1_ref, b1_ref, w2_ref, b2_ref, w3_ref, b3_ref, o_ref):
    # x tile: (TB, 784) f32 (streamed); weights bf16 (resident); biases f32;
    # output (TB, 128) bf16.
    x = x_ref[...].astype(jnp.bfloat16)  # cast in-kernel; no extra HBM pass

    # Layer 1: bf16 MXU matmul, f32 accumulate, f32 elementwise.
    h1 = jnp.dot(x, w1_ref[...], preferred_element_type=jnp.float32) + b1_ref[...]
    h1 = jnp.maximum(h1, 0.0)

    # Layer 2
    h2 = jnp.dot(h1.astype(jnp.bfloat16), w2_ref[...],
                 preferred_element_type=jnp.float32) + b2_ref[...]
    h2 = jnp.maximum(h2, 0.0)

    # Layer 3 (output padded to 128 lanes; pad lanes have bias -1e30 -> exp == 0)
    logits = jnp.dot(h2.astype(jnp.bfloat16), w3_ref[...],
                     preferred_element_type=jnp.float32) + b3_ref[...]

    # Numerically stable softmax over dim=1 (pad lanes contribute exactly 0).
    m = jnp.max(logits, axis=1, keepdims=True)
    e = jnp.exp(logits - m)
    s = jnp.sum(e, axis=1, keepdims=True)
    o_ref[...] = (e * pl.reciprocal(s, approx=True)).astype(o_ref.dtype)


def prepare_params(params):
    """One-time layout / dtype prep (hoisted out of the per-call path).

    params: PyTorch-style dict with w* of shape (out, in), b* of shape (out,).
    Returns a tuple of arrays laid out for the kernel.
    """
    w1 = params["w1"].T.astype(jnp.bfloat16)                    # (784, 30)
    w2 = params["w2"].T.astype(jnp.bfloat16)                    # (30, 30)
    w3 = jnp.pad(params["w3"].T.astype(jnp.float32),            # (30, 128)
                 ((0, 0), (0, _OUT_PAD - _OUT))).astype(jnp.bfloat16)
    b1 = params["b1"].reshape(1, _H).astype(jnp.float32)
    b2 = params["b2"].reshape(1, _H).astype(jnp.float32)
    # b3 MUST remain f32: pad lanes carry -1e30 to zero out exp() in softmax.
    b3 = jnp.full((1, _OUT_PAD), -1e30, jnp.float32)
    b3 = b3.at[0, :_OUT].set(params["b3"].astype(jnp.float32))
    return w1, b1, w2, b2, w3, b3


def mlp_forward(x, prepared, *, tb=2048):
    """x: (B, 784) float. prepared: output of prepare_params(). Returns (B, 10) f32."""
    w1, b1, w2, b2, w3, b3 = prepared
    B = x.shape[0]
    x = x.astype(jnp.float32)  # no-op for f32 inputs; kernel casts to bf16 itself

    # Batch tile: multiple of 16 (bf16 output sublane packing), capped at `tb`.
    TB = min(tb, _round_up(B, 16))
    # Ensure >=2 grid steps for medium/large batches so v7x megacore can shard
    # the parallel batch axis across both TensorCores (only when each step still
    # has >=256 rows, so step overhead stays amortized).
    half = _round_up(-(-B // 2), 16)
    if half >= 256:
        TB = min(TB, half)

    grid = (pl.cdiv(B, TB),)
    # NOTE: no batch padding.  The last block may be partial: its undefined rows
    # compute garbage (possibly inf/nan) but all math is row-wise and Pallas
    # masks the tail writeback, so valid rows are exact.

    out = pl.pallas_call(
        _mlp_kernel,
        out_shape=jax.ShapeDtypeStruct((B, _OUT_PAD), jnp.bfloat16),
        grid_spec=pltpu.PrefetchScalarGridSpec(
            num_scalar_prefetch=0,
            grid=grid,
            in_specs=[
                pl.BlockSpec((TB, _IN), lambda i: (i, 0)),   # x tile (pipelined, f32)
                pl.BlockSpec(w1.shape, lambda i: (0, 0)),    # w1 (resident)
                pl.BlockSpec(b1.shape, lambda i: (0, 0)),    # b1
                pl.BlockSpec(w2.shape, lambda i: (0, 0)),    # w2
                pl.BlockSpec(b2.shape, lambda i: (0, 0)),    # b2
                pl.BlockSpec(w3.shape, lambda i: (0, 0)),    # w3 (padded to 128)
                pl.BlockSpec(b3.shape, lambda i: (0, 0)),    # b3 (padded, -1e30, f32)
            ],
            out_specs=pl.BlockSpec((TB, _OUT_PAD), lambda i: (i, 0)),
        ),
        compiler_params=pltpu.CompilerParams(
            dimension_semantics=("parallel",),   # batch axis: megacore-shardable
            vmem_limit_bytes=48 * 1024 * 1024,   # < 64 MiB (v7x physical VMEM)
        ),
    )(x, w1, b1, w2, b2, w3, b3)

    # Tiny slice+cast (10 lanes/row); keeps the torch-like f32 interface.
    return out[:, :_OUT].astype(jnp.float32)


def init_params(key):
    """Deterministic, PyTorch-shaped (out, in) weights/biases."""
    k1, k2, k3, k4, k5, k6 = jax.random.split(key, 6)
    scale = 0.05
    return {
        "w1": scale * jax.random.normal(k1, (30, 784), jnp.float32),
        "b1": scale * jax.random.normal(k2, (30,), jnp.float32),
        "w2": scale * jax.random.normal(k3, (30, 30), jnp.float32),
        "b2": scale * jax.random.normal(k4, (30,), jnp.float32),
        "w3": scale * jax.random.normal(k5, (10, 30), jnp.float32),
        "b3": scale * jax.random.normal(k6, (10,), jnp.float32),
    }


def _ref(x, p):
    # Pure-JAX f32 reference (same math as the torch module).
    h = jnp.maximum(x @ p["w1"].T + p["b1"], 0.0)
    h = jnp.maximum(h @ p["w2"].T + p["b2"], 0.0)
    z = h @ p["w3"].T + p["b3"]
    return jax.nn.softmax(z, axis=1)


if __name__ == "__main__":
    key = jax.random.PRNGKey(0)
    kx, kp, kx2 = jax.random.split(key, 3)

    params = init_params(kp)
    prepared = prepare_params(params)

    # Small test (single, partial tile: B=8 < TB=16).
    B = 8
    x = jax.random.normal(kx, (B, _IN), jnp.float32)
    out = jax.block_until_ready(mlp_forward(x, prepared))
    assert out.shape == (B, _OUT)
    # Row sums ~1 (loosened for bf16 output + approximate reciprocal).
    assert bool(jnp.allclose(jnp.sum(out, axis=1), 1.0, atol=2e-2))
    # Loosened tolerance vs f32 reference (bf16 weights/activations/output).
    assert bool(jnp.allclose(out, _ref(x, params), atol=3e-2))

    # Multi-tile test: pipelined grid with a partial tail block (300 = 2*128 + 44),
    # no batch padding involved.
    B2 = 300
    x2 = jax.random.normal(kx2, (B2, _IN), jnp.float32)
    out2 = jax.block_until_ready(mlp_forward(x2, prepared, tb=128))
    assert out2.shape == (B2, _OUT)
    assert bool(jnp.allclose(jnp.sum(out2, axis=1), 1.0, atol=2e-2))
    assert bool(jnp.allclose(out2, _ref(x2, params), atol=3e-2))

    print("KERNEL_OK")
</pallas_src>

<mosaic_0001>
module attributes {stable_mosaic.version = 11 : i64} {
  func.func @_mlp_kernel(%arg0: i32, %arg1: memref<16x784xf32, #tpu.memory_space<vmem>>, %arg2: memref<784x30xbf16, #tpu.memory_space<vmem>>, %arg3: memref<1x30xf32, #tpu.memory_space<vmem>>, %arg4: memref<30x30xbf16, #tpu.memory_space<vmem>>, %arg5: memref<1x30xf32, #tpu.memory_space<vmem>>, %arg6: memref<30x128xbf16, #tpu.memory_space<vmem>>, %arg7: memref<1x128xf32, #tpu.memory_space<vmem>>, %arg8: memref<16x128xbf16, #tpu.memory_space<vmem>>) attributes {dimension_semantics = [#tpu.dimension_semantics<parallel>], iteration_bounds = array<i64: 1>, scalar_prefetch = 0 : i64, scratch_operands = 0 : i64, tpu.core_type = #tpu.core_type<tc>, window_params = [{transform_indices = @transform_0, window_bounds = array<i64: 16, 784>}, {pipeline_mode = #tpu.pipeline_mode<synchronous>, transform_indices = @transform_1, window_bounds = array<i64: 784, 30>}, {pipeline_mode = #tpu.pipeline_mode<synchronous>, transform_indices = @transform_2, window_bounds = array<i64: 1, 30>}, {pipeline_mode = #tpu.pipeline_mode<synchronous>, transform_indices = @transform_3, window_bounds = array<i64: 30, 30>}, {pipeline_mode = #tpu.pipeline_mode<synchronous>, transform_indices = @transform_4, window_bounds = array<i64: 1, 30>}, {pipeline_mode = #tpu.pipeline_mode<synchronous>, transform_indices = @transform_5, window_bounds = array<i64: 30, 128>}, {pipeline_mode = #tpu.pipeline_mode<synchronous>, transform_indices = @transform_6, window_bounds = array<i64: 1, 128>}, {transform_indices = @transform_7, window_bounds = array<i64: 16, 128>}]} {
    %c0 = arith.constant 0 : index
    %c0_0 = arith.constant 0 : index
    %0 = vector.load %arg1[%c0, %c0_0] : memref<16x784xf32, #tpu.memory_space<vmem>>, vector<16x784xf32>
    %1 = arith.truncf %0 : vector<16x784xf32> to vector<16x784xbf16>
    %c0_1 = arith.constant 0 : index
    %c0_2 = arith.constant 0 : index
    %2 = vector.load %arg2[%c0_1, %c0_2] : memref<784x30xbf16, #tpu.memory_space<vmem>>, vector<784x30xbf16>
    %cst = arith.constant dense<0.000000e+00> : vector<16x30xf32>
    %3 = tpu.matmul %1, %2, %cst {dimension_numbers = #tpu.dot_dimension_numbers<[1], [0], [0], [1], [0, 0, 1, 1], [], []>} : vector<16x784xbf16>, vector<784x30xbf16>, vector<16x30xf32> -> vector<16x30xf32>
    %c0_3 = arith.constant 0 : index
    %c0_4 = arith.constant 0 : index
    %4 = vector.load %arg3[%c0_3, %c0_4] : memref<1x30xf32, #tpu.memory_space<vmem>>, vector<1x30xf32>
    %5 = vector.broadcast %4 : vector<1x30xf32> to vector<16x30xf32>
    %6 = arith.addf %3, %5 : vector<16x30xf32>
    %cst_5 = arith.constant 0.000000e+00 : f32
    %7 = vector.broadcast %cst_5 : f32 to vector<16x30xf32>
    %8 = arith.maximumf %6, %7 : vector<16x30xf32>
    %9 = arith.truncf %8 : vector<16x30xf32> to vector<16x30xbf16>
    %c0_6 = arith.constant 0 : index
    %c0_7 = arith.constant 0 : index
    %10 = vector.load %arg4[%c0_6, %c0_7] : memref<30x30xbf16, #tpu.memory_space<vmem>>, vector<30x30xbf16>
    %cst_8 = arith.constant dense<0.000000e+00> : vector<16x30xf32>
    %11 = tpu.matmul %9, %10, %cst_8 {dimension_numbers = #tpu.dot_dimension_numbers<[1], [0], [0], [1], [0, 0, 1, 1], [], []>} : vector<16x30xbf16>, vector<30x30xbf16>, vector<16x30xf32> -> vector<16x30xf32>
    %c0_9 = arith.constant 0 : index
    %c0_10 = arith.constant 0 : index
    %12 = vector.load %arg5[%c0_9, %c0_10] : memref<1x30xf32, #tpu.memory_space<vmem>>, vector<1x30xf32>
    %13 = vector.broadcast %12 : vector<1x30xf32> to vector<16x30xf32>
    %14 = arith.addf %11, %13 : vector<16x30xf32>
    %cst_11 = arith.constant 0.000000e+00 : f32
    %15 = vector.broadcast %cst_11 : f32 to vector<16x30xf32>
    %16 = arith.maximumf %14, %15 : vector<16x30xf32>
    %17 = arith.truncf %16 : vector<16x30xf32> to vector<16x30xbf16>
    %c0_12 = arith.constant 0 : index
    %c0_13 = arith.constant 0 : index
    %18 = vector.load %arg6[%c0_12, %c0_13] : memref<30x128xbf16, #tpu.memory_space<vmem>>, vector<30x128xbf16>
    %cst_14 = arith.constant dense<0.000000e+00> : vector<16x128xf32>
    %19 = tpu.matmul %17, %18, %cst_14 {dimension_numbers = #tpu.dot_dimension_numbers<[1], [0], [0], [1], [0, 0, 1, 1], [], []>} : vector<16x30xbf16>, vector<30x128xbf16>, vector<16x128xf32> -> vector<16x128xf32>
    %c0_15 = arith.constant 0 : index
    %c0_16 = arith.constant 0 : index
    %20 = vector.load %arg7[%c0_15, %c0_16] : memref<1x128xf32, #tpu.memory_space<vmem>>, vector<1x128xf32>
    %21 = vector.broadcast %20 : vector<1x128xf32> to vector<16x128xf32>
    %22 = arith.addf %19, %21 : vector<16x128xf32>
    %cst_17 = arith.constant dense<0xFF800000> : vector<16xf32>
    %23 = vector.multi_reduction <maximumf>, %22, %cst_17 [1] : vector<16x128xf32> to vector<16xf32>
    %24 = vector.shape_cast %23 : vector<16xf32> to vector<16x1xf32>
    %25 = vector.broadcast %24 : vector<16x1xf32> to vector<16x128xf32>
    %26 = arith.subf %22, %25 : vector<16x128xf32>
    %27 = math.exp %26 : vector<16x128xf32>
    %cst_18 = arith.constant dense<0.000000e+00> : vector<16xf32>
    %28 = vector.multi_reduction <add>, %27, %cst_18 [1] : vector<16x128xf32> to vector<16xf32>
    %29 = vector.shape_cast %28 : vector<16xf32> to vector<16x1xf32>
    %30 = tpu.reciprocal %29 {approx = true} : vector<16x1xf32> -> vector<16x1xf32>
    %31 = vector.broadcast %30 : vector<16x1xf32> to vector<16x128xf32>
    %32 = arith.mulf %27, %31 : vector<16x128xf32>
    %33 = arith.truncf %32 : vector<16x128xf32> to vector<16x128xbf16>
    %c0_19 = arith.constant 0 : index
    %c0_20 = arith.constant 0 : index
    %34 = vector.load %arg8[%c0_19, %c0_20] : memref<16x128xbf16, #tpu.memory_space<vmem>>, vector<16x128xbf16>
    tpu.vector_store %arg8[%c0_19, %c0_20], %33 {strides = array<i32>} : memref<16x128xbf16, #tpu.memory_space<vmem>>, vector<16x128xbf16>,
    return
  }
  func.func @transform_0(%arg0: i32) -> (i32, i32) {
    %c0_i32 = arith.constant 0 : i32
    %c0_i32_0 = arith.constant 0 : i32
    return %arg0, %c0_i32 : i32, i32
  }
  func.func @transform_1(%arg0: i32) -> (i32, i32) {
    %c0_i32 = arith.constant 0 : i32
    %c0_i32_0 = arith.constant 0 : i32
    %c0_i32_1 = arith.constant 0 : i32
    return %c0_i32, %c0_i32_0 : i32, i32
  }
  func.func @transform_2(%arg0: i32) -> (i32, i32) {
    %c0_i32 = arith.constant 0 : i32
    %c0_i32_0 = arith.constant 0 : i32
    %c0_i32_1 = arith.constant 0 : i32
    return %c0_i32, %c0_i32_0 : i32, i32
  }
  func.func @transform_3(%arg0: i32) -> (i32, i32) {
    %c0_i32 = arith.constant 0 : i32
    %c0_i32_0 = arith.constant 0 : i32
    %c0_i32_1 = arith.constant 0 : i32
    return %c0_i32, %c0_i32_0 : i32, i32
  }
  func.func @transform_4(%arg0: i32) -> (i32, i32) {
    %c0_i32 = arith.constant 0 : i32
    %c0_i32_0 = arith.constant 0 : i32
    %c0_i32_1 = arith.constant 0 : i32
    return %c0_i32, %c0_i32_0 : i32, i32
  }
  func.func @transform_5(%arg0: i32) -> (i32, i32) {
    %c0_i32 = arith.constant 0 : i32
    %c0_i32_0 = arith.constant 0 : i32
    %c0_i32_1 = arith.constant 0 : i32
    return %c0_i32, %c0_i32_0 : i32, i32
  }
  func.func @transform_6(%arg0: i32) -> (i32, i32) {
    %c0_i32 = arith.constant 0 : i32
    %c0_i32_0 = arith.constant 0 : i32
    %c0_i32_1 = arith.constant 0 : i32
    return %c0_i32, %c0_i32_0 : i32, i32
  }
  func.func @transform_7(%arg0: i32) -> (i32, i32) {
    %c0_i32 = arith.constant 0 : i32
    %c0_i32_0 = arith.constant 0 : i32
    return %arg0, %c0_i32 : i32, i32
  }
}

</mosaic_0001>

<bundles_post_ra>
// kernel: tpu_custom_call.1
= control target key start
LH: loop header
LB: loop body
LE: loop exit
PB: predicated region body
PF: predicated region fallthrough
CT: control target
= control target key end

     0   :  { %12 = vsyncpa [#allocation3], 0  ;;  %vm445_vm0 = vcmask 130048   ;;  %vm573_vm1 = vcmask 1046528   ;;  %vm569_vm2 = vcmask 244736   ;;  %s1248_s0 = inlined_call_operand.vmem [shape: f32[8,784], index: 0, kind: input, shape index: {}]   ;;  %s1249_s1 = inlined_call_operand.vmem [shape: bf16[784,30], index: 1, kind: input, shape index: {}]   ;;  %s1250_s2 = inlined_call_operand.vmem [shape: f32[1,30], index: 2, kind: input, shape index: {}]   ;;  %s1251_s3 = inlined_call_operand.vmem [shape: bf16[30,30], index: 3, kind: input, shape index: {}]   ;;  %s1252_s4 = inlined_call_operand.vmem [shape: f32[1,30], index: 4, kind: input, shape index: {}]   ;;  %s1253_s5 = inlined_call_operand.vmem [shape: bf16[30,128], index: 5, kind: input, shape index: {}]   ;;  %s1254_s6 = inlined_call_operand.vmem [shape: f32[1,128], index: 6, kind: input, shape index: {}]   ;;  %s1255_s7 = inlined_call_operand.hbm [shape: bf16[8,128], index: 7, kind: output, shape index: {}]  }
   0x1   :  { %v895_v0 = vld [vmem:[%s1249_s1 + $0x38] sm:$0xff]  ;;  %v894_v3 = vld [vmem:[%s1249_s1 + $0x30] sm:$0xff]  ;;  %v893_v8 = vld [vmem:[%s1249_s1 + $0x28] sm:$0xff] }
   0x2   :  { %v903_v1 = vld [vmem:[%s1249_s1 + $0x78] sm:$0xff]  ;;  %449 = vmatpush.bf16.msra.mxu0 %v895_v0  ;;  %v902_v4 = vld [vmem:[%s1249_s1 + $0x70] sm:$0xff]  ;;  %v901_v9 = vld [vmem:[%s1249_s1 + $0x68] sm:$0xff] }
   0x3   :  { %v911_v2 = vld [vmem:[%s1249_s1 + $0xb8] sm:$0xff]  ;;  %463 = vmatpush.bf16.msra.mxu1 %v903_v1  ;;  %v910_v6 = vld [vmem:[%s1249_s1 + $0xb0] sm:$0xff]  ;;  %v909_v10 = vld [vmem:[%s1249_s1 + $0xa8] sm:$0xff] }
   0x4   :  { %v919_v5 = vld [vmem:[%s1249_s1 + $0xf8] sm:$0xff]  ;;  %477 = vmatpush.bf16.msra.mxu2 %v911_v2  ;;  %v918_v7 = vld [vmem:[%s1249_s1 + $0xf0] sm:$0xff]  ;;  %v917_v11 = vld [vmem:[%s1249_s1 + $0xe8] sm:$0xff] }
   0x5   :  { %491 = vmatpush.bf16.msra.mxu3 %v919_v5  ;;  %v892_v12 = vld [vmem:[%s1249_s1 + $0x20] sm:$0xff]  ;;  %v891_v16 = vld [vmem:[%s1249_s1 + $0x18] sm:$0xff]  ;;  %v890_v20 = vld [vmem:[%s1249_s1 + $0x10] sm:$0xff] }
   0x6   :  { %450 = vmatpush.bf16.msra.mxu0 %v894_v3  ;;  %v900_v13 = vld [vmem:[%s1249_s1 + $0x60] sm:$0xff]  ;;  %v899_v17 = vld [vmem:[%s1249_s1 + $0x58] sm:$0xff]  ;;  %v898_v21 = vld [vmem:[%s1249_s1 + $0x50] sm:$0xff] }
   0x7   :  { %464 = vmatpush.bf16.msra.mxu1 %v902_v4  ;;  %v908_v14 = vld [vmem:[%s1249_s1 + $0xa0] sm:$0xff]  ;;  %v907_v18 = vld [vmem:[%s1249_s1 + $0x98] sm:$0xff]  ;;  %v906_v22 = vld [vmem:[%s1249_s1 + $0x90] sm:$0xff] }
   0x8   :  { %478 = vmatpush.bf16.msra.mxu2 %v910_v6  ;;  %v916_v15 = vld [vmem:[%s1249_s1 + $0xe0] sm:$0xff]  ;;  %v915_v19 = vld [vmem:[%s1249_s1 + $0xd8] sm:$0xff]  ;;  %v914_v23 = vld [vmem:[%s1249_s1 + $0xd0] sm:$0xff] }
   0x9   :  { %492 = vmatpush.bf16.msra.mxu3 %v918_v7  ;;  %v889_v24 = vld [vmem:[%s1249_s1 + $0x8] sm:$0xff]  ;;  %v888_v28 = vld [vmem:[%s1249_s1] sm:$0xff]  ;;  %v35_v31 = vld [vmem:[%s1248_s0 + $0x38] sm:$0xff] }
   0xa   :  { %451 = vmatpush.bf16.msra.mxu0 %v893_v8  ;;  %v897_v25 = vld [vmem:[%s1249_s1 + $0x48] sm:$0xff]  ;;  %v896_v29 = vld [vmem:[%s1249_s1 + $0x40] sm:$0xff]  ;;  %v927_v34 = vld [vmem:[%s1249_s1 + $0x138] sm:$0xff] }
   0xb   :  { %465 = vmatpush.bf16.msra.mxu1 %v901_v9  ;;  %v905_v26 = vld [vmem:[%s1249_s1 + $0x88] sm:$0xff]  ;;  %v28_v30 = vld [vmem:[%s1248_s0] sm:$0xff]  ;;  %v935_v35 = vld [vmem:[%s1249_s1 + $0x178] sm:$0xff] }
   0xc   :  { %479 = vmatpush.bf16.msra.mxu2 %v909_v10  ;;  %v913_v27 = vld [vmem:[%s1249_s1 + $0xc8] sm:$0xff]  ;;  %v36_v33 = vld [vmem:[%s1248_s0 + $0x40] sm:$0xff]  ;;  %v30_v38 = vld [vmem:[%s1248_s0 + $0x10] sm:$0xff]  ;;  %v42_v40 = vpack.c.bf16 %v35_v31, %v28_v30 }
   0xd   :  { %493 = vmatpush.bf16.msra.mxu3 %v917_v11  ;;  %v29_v32 = vld [vmem:[%s1248_s0 + $0x8] sm:$0xff]  ;;  %v904_v36 = vld [vmem:[%s1249_s1 + $0x80] sm:$0xff]  ;;  %v31_v41 = vld [vmem:[%s1248_s0 + $0x18] sm:$0xff] }
   0xe   :  { %452 = vmatpush.bf16.msra.mxu0 %v892_v12  ;;  %v912_v37 = vld [vmem:[%s1249_s1 + $0xc0] sm:$0xff]  ;;  %v37_v39 = vld [vmem:[%s1248_s0 + $0x48] sm:$0xff]  ;;  %v38_v42 = vld [vmem:[%s1248_s0 + $0x50] sm:$0xff]  ;;  %v43_v43 = vpack.c.bf16 %v36_v33, %v29_v32 }
   0xf   :  { %466 = vmatpush.bf16.msra.mxu1 %v900_v13  ;;  %v936_v44 = vld [vmem:[%s1249_s1 + $0x180] sm:$0xff]  ;;  %v926_v45 = vld [vmem:[%s1249_s1 + $0x130] sm:$0xff]  ;;  %v44_v47 = vpack.c.bf16 %v37_v39, %v30_v38  ;;  %v45_v48 = vpack.c.bf16 %v38_v42, %v31_v41  ;;  %v925_v49 = vld [vmem:[%s1249_s1 + $0x128] sm:$0xff] }
  0x10   :  { %480 = vmatpush.bf16.msra.mxu2 %v908_v14  ;;  %v934_v46 = vld [vmem:[%s1249_s1 + $0x170] sm:$0xff]  ;;  %v933_v50 = vld [vmem:[%s1249_s1 + $0x168] sm:$0xff]  ;;  %v924_v51 = vld [vmem:[%s1249_s1 + $0x120] sm:$0xff] }
  0x11   :  { %494 = vmatpush.bf16.msra.mxu3 %v916_v15  ;;  %v932_v52 = vld [vmem:[%s1249_s1 + $0x160] sm:$0xff]  ;;  %v923_v53 = vld [vmem:[%s1249_s1 + $0x118] sm:$0xff]  ;;  %v34_v55 = vld [vmem:[%s1248_s0 + $0x30] sm:$0xff] }
  0x12   :  { %453 = vmatpush.bf16.msra.mxu0 %v891_v16  ;;  %v931_v54 = vld [vmem:[%s1249_s1 + $0x158] sm:$0xff]  ;;  %v41_v56 = vld [vmem:[%s1248_s0 + $0x68] sm:$0xff]  ;;  %v922_v57 = vld [vmem:[%s1249_s1 + $0x110] sm:$0xff] }
  0x13   :  { %467 = vmatpush.bf16.msra.mxu1 %v899_v17  ;;  %v930_v58 = vld [vmem:[%s1249_s1 + $0x150] sm:$0xff]  ;;  %v48_v59 = vpack.c.bf16 %v41_v56, %v34_v55  ;;  %v921_v60 = vld [vmem:[%s1249_s1 + $0x108] sm:$0xff]  ;;  %v920_v62 = vld [vmem:[%s1249_s1 + $0x100] sm:$0xff] }
  0x14   :  { %481 = vmatpush.bf16.msra.mxu2 %v907_v18  ;;  %v929_v61 = vld [vmem:[%s1249_s1 + $0x148] sm:$0xff]  ;;  %v928_v63 = vld [vmem:[%s1249_s1 + $0x140] sm:$0xff]  ;;  %v39_v1 = vld [vmem:[%s1248_s0 + $0x58] sm:$0xff] }
  0x15   :  { %495 = vmatpush.bf16.msra.mxu3 %v915_v19  ;;  %v32_v0 = vld [vmem:[%s1248_s0 + $0x20] sm:$0xff]  ;;  %v33_v2 = vld [vmem:[%s1248_s0 + $0x28] sm:$0xff] }
  0x16   :  { %454 = vmatpush.bf16.msra.mxu0 %v890_v20  ;;  %v40_v3 = vld [vmem:[%s1248_s0 + $0x60] sm:$0xff]  ;;  %v46_v4 = vpack.c.bf16 %v39_v1, %v32_v0  ;;  %v876_v6 = vld [vmem:[%s1251_s3 + $0x8] sm:$0xf]  ;;  %v938_v7 = vld [vmem:[%s1251_s3 + $0x8] sm:$0x70] }
  0x17   :  { %468 = vmatpush.bf16.msra.mxu1 %v898_v21  ;;  %v47_v5 = vpack.c.bf16 %v40_v3, %v33_v2  ;;  %v877_v8 = vor.u32 %v938_v7, %v876_v6  ;;  %v885_v9 = vld [vmem:[%s1253_s5 + $0x8] sm:$0xf]  ;;  %v940_v10 = vld [vmem:[%s1253_s5 + $0x8] sm:$0x70]  ;;  %v937_v17 = vld [vmem:[%s1251_s3] sm:$0xff] }
  0x18   :  { %482 = vmatpush.bf16.msra.mxu2 %v906_v22  ;;  %v886_v11 = vor.u32 %v940_v10, %v885_v9  ;;  %v949_v18 = vld [vmem:[%s1250_s2] ss:$0 sm:$0xff] }
  0x19   :  { %496 = vmatpush.bf16.msra.mxu3 %v914_v23  ;;  %v575_v12 = vsel %vm573_vm1, %v877_v8, 0  ;;  %v951_v56 = vld [vmem:[%s1254_s6] ss:$0 sm:$0xff] }
  0x1a   :  { %455 = vmatpush.bf16.msra.mxu0 %v889_v24  ;;  %v617_v13 = vsel %vm573_vm1, %v886_v11, 0 }
  0x1b   :  { %469 = vmatpush.bf16.msra.mxu1 %v897_v25 }
  0x1c   :  { %483 = vmatpush.bf16.msra.mxu2 %v905_v26 }
  0x1d   :  { %497 = vmatpush.bf16.msra.mxu3 %v913_v27 }
  0x1e   :  { %456 = vmatpush.bf16.msra.mxu0 %v888_v28 }
  0x1f   :  { %470 = vmatpush.bf16.msra.mxu1 %v896_v29 }
  0x20   :  { %484 = vmatpush.bf16.msra.mxu2 %v904_v36 }
  0x21   :  { %498 = vmatpush.bf16.msra.mxu3 %v912_v37  ;;  %457 = vmatmul.bf16.vlgmr.msra.gmra.mxu0 %v42_v40 }
  0x22   :  { %505 = vmatpush.bf16.msrb.mxu0 %v927_v34  ;;  %471 = vmatmul.bf16.vlgmr.msra.gmra.mxu1 %v43_v43 }
  0x23   :  { %519 = vmatpush.bf16.msrb.mxu1 %v935_v35  ;;  %485 = vmatmul.bf16.vlgmr.msra.gmra.mxu2 %v44_v47  ;;  %v939_v47 = vld [vmem:[%s1253_s5] sm:$0xff] }
  0x24   :  { %540 = vmatpush.bf16.msrb.mxu2 %v936_v44  ;;  %499 = vmatmul.bf16.vlgmr.msra.gmra.mxu3 %v45_v48 }
  0x25   :  { %583 = vmatpush.bf16.msrb.mxu3 %v575_v12 }
  0x26   :  { %506 = vmatpush.bf16.msrb.mxu0 %v926_v45 }
  0x27   :  { %520 = vmatpush.bf16.msrb.mxu1 %v934_v46 }
  0x28   :  { %625 = vmatpush.bf16.msra.mxu2 %v617_v13 }
  0x29   :  { %584 = vmatpush.bf16.msrb.mxu3 %v937_v17 }
  0x2a   :  { %507 = vmatpush.bf16.msrb.mxu0 %v925_v49  ;;  %v950_v49 = vld [vmem:[%s1252_s4] ss:$0 sm:$0xff] }
  0x2b   :  { %521 = vmatpush.bf16.msrb.mxu1 %v933_v50 }
  0x2c   :  { %626 = vmatpush.bf16.msra.mxu2 %v939_v47 }
  0x2e   :  { %508 = vmatpush.bf16.msrb.mxu0 %v924_v51 }
  0x2f   :  { %522 = vmatpush.bf16.msrb.mxu1 %v932_v52 }
  0x32   :  { %509 = vmatpush.bf16.msrb.mxu0 %v923_v53 }
  0x33   :  { %523 = vmatpush.bf16.msrb.mxu1 %v931_v54  ;;  %869 = vmatmul.msk.bf16.vlgmr.msrb.gmra.mxu2 %vm445_vm0, %v48_v59 }
  0x36   :  { %510 = vmatpush.bf16.msrb.mxu0 %v922_v57 }
  0x37   :  { %524 = vmatpush.bf16.msrb.mxu1 %v930_v58 }
  0x3a   :  { %511 = vmatpush.bf16.msrb.mxu0 %v921_v60 }
  0x3b   :  { %525 = vmatpush.bf16.msrb.mxu1 %v929_v61 }
  0x3e   :  { %512 = vmatpush.bf16.msrb.mxu0 %v920_v62 }
  0x3f   :  { %526 = vmatpush.bf16.msrb.mxu1 %v928_v63 }
  0x41   :  { %513 = vmatmul.bf16.vlgmr.msrb.gmra.mxu0 %v46_v4 }
  0x42   :  { %527 = vmatmul.bf16.vlgmr.msrb.gmra.mxu1 %v47_v5 }
  0x9e   :  { %v458_v14 = vpop.f32.mrf.mxu0 }
  0x9f   :  { %v472_v15 = vpop.f32.mrf.mxu1  ;;  %v459_v19 = vadd.f32 %v949_v18, %v458_v14 }
  0xa1   :  { %v473_v23 = vadd.f32 %v472_v15, %v459_v19 }
  0xa6   :  { %v486_v16 = vpop.f32.mrf.mxu2  ;;  %v460_v20 = vpop.f32.mrf.mxu0 }
  0xa7   :  { %v474_v21 = vpop.f32.mrf.mxu1  ;;  %v500_v24 = vpop.f32.mrf.mxu3  ;;  %v461_v25 = vadd.f32 %v949_v18, %v460_v20  ;;  %v487_v26 = vadd.f32 %v486_v16, %v473_v23 }
  0xa9   :  { %v475_v27 = vadd.f32 %v474_v21, %v461_v25  ;;  %v501_v30 = vadd.f32 %v500_v24, %v487_v26 }
  0xae   :  { %v488_v22 = vpop.f32.mrf.mxu2 }
  0xaf   :  { %v489_v32 = vadd.f32 %v488_v22, %v475_v27  ;;  %v502_v34 = vpop.f32.mrf.mxu3 }
  0xb1   :  { %v503_v35 = vadd.f32 %v502_v34, %v489_v32 }
  0xb6   :  { %v542_v31 = vpop.f32.mrf.mxu2 }
  0xbe   :  { %v514_v28 = vpop.f32.mrf.mxu0  ;;  %v544_v42 = vpop.f32.mrf.mxu2 }
  0xbf   :  { %v528_v29 = vpop.f32.mrf.mxu1  ;;  %v515_v33 = vadd.f32 %v514_v28, %v501_v30 }
  0xc1   :  { %v529_v36 = vadd.f32 %v528_v29, %v515_v33 }
  0xc3   :  { %v543_v40 = vadd.f32 %v542_v31, %v529_v36 }
  0xc5   :  { %v547_v44 = vmax.f32 %v543_v40, 0.0 }
  0xc6   :  { %v516_v37 = vpop.f32.mrf.mxu0 }
  0xc7   :  { %v517_v38 = vadd.f32 %v516_v37, %v503_v35  ;;  %v530_v39 = vpop.f32.mrf.mxu1 }
  0xc9   :  { %v531_v41 = vadd.f32 %v530_v39, %v517_v38 }
  0xcb   :  { %v545_v43 = vadd.f32 %v544_v42, %v531_v41 }
  0xcd   :  { %v548_v45 = vmax.f32 %v545_v43, 0.0 }
  0xcf   :  { %v549_v46 = vpack.c.bf16 %v548_v45, %v547_v44 }
  0xd1   :  { %878 = vmatmul.msk.bf16.vlgmr.msrb.gmra.mxu3 %vm569_vm2, %v549_v46 }
 0x154   :  { %v586_v48 = vpop.f32.mrf.mxu3 }
 0x155   :  { %v587_v50 = vadd.f32 %v950_v49, %v586_v48 }
 0x157   :  { %v591_v53 = vmax.f32 %v587_v50, 0.0 }
 0x15c   :  { %v588_v51 = vpop.f32.mrf.mxu3 }
 0x15d   :  { %v589_v52 = vadd.f32 %v950_v49, %v588_v51 }
 0x15f   :  { %v592_v54 = vmax.f32 %v589_v52, 0.0 }
 0x161   :  { %v593_v55 = vpack.c.bf16 %v592_v54, %v591_v53 }
 0x163   :  { %887 = vmatmul.msk.bf16.vlgmr.msra.gmra.mxu2 %vm569_vm2, %v593_v55 }
 0x1e6   :  { %v628_v57 = vpop.f32.mrf.mxu2 }
 0x1e7   :  { %v629_v58 = vadd.f32 %v951_v56, %v628_v57 }
 0x1e9   :  { %633 = vmax.xlane.f32.xlu0 %v629_v58 }
 0x1ee   :  { %v630_v59 = vpop.f32.mrf.mxu2 }
 0x1ef   :  { %v631_v60 = vadd.f32 %v951_v56, %v630_v59 }
 0x1f1   :  { %635 = vmax.xlane.f32.xlu0 %v631_v60 }
 0x25c   :  { %v634_v61 = vpop.xlane.xlu0 %633 }
 0x25d   :  { %v637_v62 = vsub.f32 %v629_v58, %v634_v61 }
 0x25f   :  { %v639_v63 = vmul.f32 1.442695, %v637_v62 }
 0x261   :  { %952 = vpow2.f32 %v639_v63 }
 0x264   :  { %v636_v0 = vpop.xlane.xlu0 %635 }
 0x265   :  { %v638_v1 = vsub.f32 %v631_v60, %v636_v0 }
 0x267   :  { %v953_v2 = vpop.eup %952  ;;  %v641_v3 = vmul.f32 1.442695, %v638_v1 }
 0x268   :  { %643 = vadd.xlane.f32.xlu1 %v953_v2 }
 0x269   :  { %954 = vpow2.f32 %v641_v3 }
 0x26f   :  { %v955_v4 = vpop.eup %954 }
 0x270   :  { %645 = vadd.xlane.f32.xlu1 %v955_v4 }
 0x2db   :  { %v644_v5 = vpop.xlane.xlu1 %643 }
 0x2dc   :  { %956 = vrcp.f32 %v644_v5 }
 0x2e2   :  { %v957_v7 = vpop.eup %956 }
 0x2e3   :  { %v646_v6 = vpop.xlane.xlu1 %645  ;;  %v649_v9 = vmul.f32 %v957_v7, %v953_v2 }
 0x2e4   :  { %958 = vrcp.f32 %v646_v6 }
 0x2ea   :  { %v959_v8 = vpop.eup %958 }
 0x2eb   :  { %v650_v10 = vmul.f32 %v959_v8, %v955_v4 }
 0x2ed   :  { %v944_v11 = vpack.c.bf16 %v650_v10, %v649_v9 }
 0x2ef   :  { %945 = vst [vmem:[#allocation2] sm:$0xff] %v944_v11  }
 0x2f0   :  { %658 = vsyncadd [#allocation3], 64  ;;  %s661_s6 = sshll.u32 %s1255_s7, 4  ;;  %s986_s26 = smov [#allocation2]   ;;  %s662_s6 = int_to_ptr.hbm [resolvable:$true] %s661_s6 }
 0x2f1   :  { %s659_s27 = sshll.u32 %s986_s26, 4  ;;  %s987_s28 = smov 64   ;;  %s660_s27 = int_to_ptr.vmem [resolvable:$true] %s659_s27 }
 0x2f2   :  { %s988_s29 = smov 4  }
 0x2f3   :  { %667 = dma.vmem_to_hbm [thread:$0]  %s660_s27, 64, %s662_s6, [#allocation3], %s987_s28, %s987_s28, %s988_s29  }
 0x2f4   :  { %984 = dma.done.wait [#allocation3], 128  }
 0x2f5   :  { %985 = vsyncadd [#allocation3], 4294967168 }
 0x2f6   :  { %672 = vsyncpa [#allocation3], 1 }

</bundles_post_ra>
